<compile_context>
chip_gen: v7x
topology: tpu7x:2x2x1
jax: 0.10.0
libtpu: 0.0.40
codegen_flags: <defaults>
</compile_context>

<pallas_src>
import numpy as np
import jax
import jax.numpy as jnp
from jax import lax
from jax.experimental import pallas as pl
from jax.experimental.pallas import tpu as pltpu


def _scale_linear_kernel(x_ref, w_ref, gate_ref, bias_ref, o_ref):
    """One (tS, tN) output tile of one batch row; K reduction on the last grid axis.

    x_ref:    (tS, tK)   activations (compute dtype)
    w_ref:    (tN, tK)   weight rows (compute dtype), contracted on the last dim
    gate_ref: (1, tN)    per-batch gate row (f32)
    bias_ref: (1, tN)    per-batch effective bias row (f32) = b_layer*gate + hyper_bias
    o_ref:    (tS, tN)   f32 output tile; doubles as the accumulator
    """
    k = pl.program_id(3)

    @pl.when(k == 0)
    def _():
        o_ref[...] = jnp.zeros_like(o_ref)

    # TODO(synk): if bit-exact f32 is required at large K, pass
    # precision=jax.lax.Precision.HIGHEST here (or use compute_dtype=bf16 explicitly).
    o_ref[...] += lax.dot_general(
        x_ref[...], w_ref[...],
        dimension_numbers=(((1,), (1,)), ((), ())),   # contract Din with Din (w is (Dout, Din))
        preferred_element_type=jnp.float32)

    @pl.when(k == pl.num_programs(3) - 1)
    def _():
        # epilogue: y * gate + (b_layer*gate + hyper_bias), broadcast (1,tN) over tS rows
        o_ref[...] = o_ref[...] * gate_ref[...] + bias_ref[...]


def _pick_tile(full, req, granule):
    """Largest multiple of `granule` <= min(req, full) that divides `full`.
    Falls back to `full`: a full-extent block needs no divisibility and no padding."""
    if full % granule != 0:
        return full
    t = max(granule, (min(req, full) // granule) * granule)
    while full % t != 0:
        t -= granule
    return t


def concat_hot_scale_linear(context, x, params, dim_c, dim_hot, *,
                            compute_dtype=None, ts=512, tn=512, tk=512):
    """context: (B, dim_c) f32; x: (B, S, dim_in) or (B, dim_in)."""
    squeeze_seq = (x.ndim == 2)
    if squeeze_seq:
        x = x[:, None, :]                                    # (B, 1, dim_in)
    B, S, dim_in = x.shape
    dim_out = params["w_layer"].shape[0]
    if compute_dtype is None:
        compute_dtype = x.dtype
    cbytes = np.dtype(compute_dtype).itemsize

    # ---- tiny hyper-network matmuls + b_layer folding: plain XLA (negligible FLOPs) ----
    hot_idx = np.concatenate(([0], np.arange(dim_c - dim_hot, dim_c)))
    ctx = context.astype(jnp.float32)
    gate = ctx[:, hot_idx] @ params["w_gate"].T + params["b_gate"]          # (B, Dout) f32
    hbias = ctx[:, : 1 + dim_c - dim_hot] @ params["w_bias"].T              # (B, Dout) f32
    bias_eff = params["b_layer"][None, :] * gate + hbias                    # (B, Dout) f32
    gate3 = gate[:, None, :]                                                 # (B, 1, Dout)
    bias3 = bias_eff[:, None, :]                                             # (B, 1, Dout)

    # ---- tile selection: divisor-or-full, so nothing is padded or transposed ----
    sub = 16 if cbytes == 2 else 8                           # bf16 sublane packing
    tS = _pick_tile(S, ts, sub)
    tN = _pick_tile(dim_out, tn, 128)                        # lane-dense when possible
    tK = _pick_tile(dim_in, tk, 128)
    grid = (B, S // tS, dim_out // tN, dim_in // tK)

    x_c = x.astype(compute_dtype)
    w_c = params["w_layer"].astype(compute_dtype)            # (Dout, Din), no transpose/pad

    # ---- VMEM budget: double-buffered x/w/gate/bias + resident f32 output tile ----
    working = (2 * (tS * tK + tN * tK) * cbytes              # x, w (double-buffered)
               + 2 * tS * tN * 4                             # output tile
               + 2 * 2 * tN * 4)                             # gate, bias rows
    vmem_limit = int(min(48 * 2**20, max(32 * 2**20, 4 * working)))

    M = B * S
    cost = pl.CostEstimate(
        flops=2 * M * dim_out * dim_in + 2 * M * dim_out,
        bytes_accessed=(M * dim_in + dim_out * dim_in) * cbytes
                       + (2 * B * dim_out + M * dim_out) * 4,
        transcendentals=0)

    out = pl.pallas_call(
        _scale_linear_kernel,
        out_shape=jax.ShapeDtypeStruct((B, S, dim_out), jnp.float32),
        grid_spec=pltpu.PrefetchScalarGridSpec(
            num_scalar_prefetch=0,
            grid=grid,
            in_specs=[
                pl.BlockSpec((None, tS, tK), lambda b, s, j, k: (b, s, k)),   # x
                pl.BlockSpec((tN, tK),       lambda b, s, j, k: (j, k)),      # w_layer (Dout, Din)
                pl.BlockSpec((None, 1, tN),  lambda b, s, j, k: (b, 0, j)),   # gate row
                pl.BlockSpec((None, 1, tN),  lambda b, s, j, k: (b, 0, j)),   # bias_eff row
            ],
            out_specs=pl.BlockSpec((None, tS, tN), lambda b, s, j, k: (b, s, j)),
        ),
        compiler_params=pltpu.CompilerParams(
            dimension_semantics=("parallel", "parallel", "parallel", "arbitrary"),
            vmem_limit_bytes=vmem_limit),
        cost_estimate=cost,
    )(x_c, w_c, gate3, bias3)

    out = out.astype(x.dtype)
    if squeeze_seq:
        out = out[:, 0, :]
    return out


def init_params(key, dim_in, dim_out, dim_c, dim_hot):
    """Deterministic nn.Linear-style init (uniform +/- 1/sqrt(fan_in))."""
    ks = jax.random.split(key, 5)

    def lin_w(k, fan_out, fan_in):
        bound = 1.0 / np.sqrt(fan_in)
        return jax.random.uniform(k, (fan_out, fan_in), jnp.float32, -bound, bound)

    def lin_b(k, fan_out, fan_in):
        bound = 1.0 / np.sqrt(fan_in)
        return jax.random.uniform(k, (fan_out,), jnp.float32, -bound, bound)

    n_cold = 1 + dim_c - dim_hot
    n_hot = 1 + dim_hot
    return {
        "w_layer": lin_w(ks[0], dim_out, dim_in),
        "b_layer": lin_b(ks[1], dim_out, dim_in),
        "w_bias":  lin_w(ks[2], dim_out, n_cold),   # hyper_bias: no bias term
        "w_gate":  lin_w(ks[3], dim_out, n_hot),
        "b_gate":  lin_b(ks[4], dim_out, n_hot),
    }


def reference(context, x, params, dim_c, dim_hot):
    hot_idx = np.concatenate(([0], np.arange(dim_c - dim_hot, dim_c)))
    gate = context[:, hot_idx] @ params["w_gate"].T + params["b_gate"]
    bias = context[:, : 1 + dim_c - dim_hot] @ params["w_bias"].T
    y = x @ params["w_layer"].T + params["b_layer"]
    return y * gate[:, None, :] + bias[:, None, :]


if __name__ == "__main__":
    B, S, dim_in, dim_out = 2, 8, 32, 32
    dim_c, dim_hot = 6, 2

    key = jax.random.PRNGKey(0)
    k_ctx, k_x, k_p = jax.random.split(key, 3)

    context = jax.random.normal(k_ctx, (B, dim_c), jnp.float32)
    x = jax.random.normal(k_x, (B, S, dim_in), jnp.float32)
    params = init_params(k_p, dim_in, dim_out, dim_c, dim_hot)

    ref = reference(context, x, params, dim_c, dim_hot)

    # f32 operand path (tight tolerance)
    out = jax.block_until_ready(concat_hot_scale_linear(context, x, params, dim_c, dim_hot))
    np.testing.assert_allclose(np.asarray(out), np.asarray(ref), rtol=1e-5, atol=1e-5)

    # bf16 operand path (MXU-native; f32 accumulation; looser tolerance)
    out_bf = jax.block_until_ready(
        concat_hot_scale_linear(context, x, params, dim_c, dim_hot,
                                compute_dtype=jnp.bfloat16))
    np.testing.assert_allclose(np.asarray(out_bf), np.asarray(ref), rtol=5e-2, atol=5e-2)

    # 2-D x path (x.dim() == 2 branch of the PyTorch module)
    x2d = x[:, 0, :]
    out2d = jax.block_until_ready(
        concat_hot_scale_linear(context, x2d, params, dim_c, dim_hot))
    ref2d = reference(context, x2d[:, None, :], params, dim_c, dim_hot)[:, 0, :]
    np.testing.assert_allclose(np.asarray(out2d), np.asarray(ref2d), rtol=1e-5, atol=1e-5)

    print("KERNEL_OK")
</pallas_src>

<mosaic_0001>
module attributes {stable_mosaic.version = 11 : i64} {
  func.func @_scale_linear_kernel(%arg0: i32, %arg1: i32, %arg2: i32, %arg3: i32, %arg4: memref<1x8x32xf32, #tpu.memory_space<vmem>>, %arg5: memref<32x32xf32, #tpu.memory_space<vmem>>, %arg6: memref<1x1x32xf32, #tpu.memory_space<vmem>>, %arg7: memref<1x1x32xf32, #tpu.memory_space<vmem>>, %arg8: memref<1x8x32xf32, #tpu.memory_space<vmem>>) attributes {dimension_semantics = [#tpu.dimension_semantics<parallel>, #tpu.dimension_semantics<parallel>, #tpu.dimension_semantics<parallel>, #tpu.dimension_semantics<arbitrary>], iteration_bounds = array<i64: 2, 1, 1, 1>, scalar_prefetch = 0 : i64, scratch_operands = 0 : i64, tpu.core_type = #tpu.core_type<tc>, window_params = [{transform_indices = @transform_0, window_bounds = array<i64: 1, 8, 32>}, {transform_indices = @transform_1, window_bounds = array<i64: 32, 32>}, {transform_indices = @transform_2, window_bounds = array<i64: 1, 1, 32>}, {transform_indices = @transform_3, window_bounds = array<i64: 1, 1, 32>}, {transform_indices = @transform_4, window_bounds = array<i64: 1, 8, 32>}]} {
    %c0_i32 = arith.constant 0 : i32
    %0 = arith.cmpi eq, %arg3, %c0_i32 : i32
    %1 = arith.extui %0 : i1 to i32
    %c0_i32_0 = arith.constant 0 : i32
    %2 = arith.cmpi ne, %1, %c0_i32_0 : i32
    scf.if %2 {
      %cst_13 = arith.constant 0.000000e+00 : f32
      %16 = vector.broadcast %cst_13 : f32 to vector<8x32xf32>
      %c0_14 = arith.constant 0 : index
      %c0_15 = arith.constant 0 : index
      %c0_16 = arith.constant 0 : index
      %17 = vector.load %arg8[%c0_14, %c0_15, %c0_16] : memref<1x8x32xf32, #tpu.memory_space<vmem>>, vector<1x8x32xf32>
      %18 = vector.shape_cast %17 : vector<1x8x32xf32> to vector<8x32xf32>
      %19 = vector.shape_cast %16 : vector<8x32xf32> to vector<1x8x32xf32>
      tpu.vector_store %arg8[%c0_14, %c0_15, %c0_16], %19 {strides = array<i32>} : memref<1x8x32xf32, #tpu.memory_space<vmem>>, vector<1x8x32xf32>,
    } else {
    }
    %c0 = arith.constant 0 : index
    %c0_1 = arith.constant 0 : index
    %c0_2 = arith.constant 0 : index
    %3 = vector.load %arg8[%c0, %c0_1, %c0_2] : memref<1x8x32xf32, #tpu.memory_space<vmem>>, vector<1x8x32xf32>
    %4 = vector.shape_cast %3 : vector<1x8x32xf32> to vector<8x32xf32>
    %c0_3 = arith.constant 0 : index
    %c0_4 = arith.constant 0 : index
    %c0_5 = arith.constant 0 : index
    %5 = vector.load %arg4[%c0_3, %c0_4, %c0_5] : memref<1x8x32xf32, #tpu.memory_space<vmem>>, vector<1x8x32xf32>
    %6 = vector.shape_cast %5 : vector<1x8x32xf32> to vector<8x32xf32>
    %c0_6 = arith.constant 0 : index
    %c0_7 = arith.constant 0 : index
    %7 = vector.load %arg5[%c0_6, %c0_7] : memref<32x32xf32, #tpu.memory_space<vmem>>, vector<32x32xf32>
    %cst = arith.constant dense<0.000000e+00> : vector<8x32xf32>
    %8 = tpu.matmul %6, %7, %cst {dimension_numbers = #tpu.dot_dimension_numbers<[1], [1], [0], [0], [0, 0, 1, 0], [], []>} : vector<8x32xf32>, vector<32x32xf32>, vector<8x32xf32> -> vector<8x32xf32>
    %9 = arith.addf %4, %8 : vector<8x32xf32>
    %c0_8 = arith.constant 0 : index
    %c0_9 = arith.constant 0 : index
    %c0_10 = arith.constant 0 : index
    %10 = vector.load %arg8[%c0_8, %c0_9, %c0_10] : memref<1x8x32xf32, #tpu.memory_space<vmem>>, vector<1x8x32xf32>
    %11 = vector.shape_cast %10 : vector<1x8x32xf32> to vector<8x32xf32>
    %12 = vector.shape_cast %9 : vector<8x32xf32> to vector<1x8x32xf32>
    tpu.vector_store %arg8[%c0_8, %c0_9, %c0_10], %12 {strides = array<i32>} : memref<1x8x32xf32, #tpu.memory_space<vmem>>, vector<1x8x32xf32>,
    %c0_i32_11 = arith.constant 0 : i32
    %13 = arith.cmpi eq, %arg3, %c0_i32_11 : i32
    %14 = arith.extui %13 : i1 to i32
    %c0_i32_12 = arith.constant 0 : i32
    %15 = arith.cmpi ne, %14, %c0_i32_12 : i32
    scf.if %15 {
      %c0_13 = arith.constant 0 : index
      %c0_14 = arith.constant 0 : index
      %c0_15 = arith.constant 0 : index
      %16 = vector.load %arg8[%c0_13, %c0_14, %c0_15] : memref<1x8x32xf32, #tpu.memory_space<vmem>>, vector<1x8x32xf32>
      %17 = vector.shape_cast %16 : vector<1x8x32xf32> to vector<8x32xf32>
      %c0_16 = arith.constant 0 : index
      %c0_17 = arith.constant 0 : index
      %c0_18 = arith.constant 0 : index
      %18 = vector.load %arg6[%c0_16, %c0_17, %c0_18] : memref<1x1x32xf32, #tpu.memory_space<vmem>>, vector<1x1x32xf32>
      %19 = vector.shape_cast %18 : vector<1x1x32xf32> to vector<1x32xf32>
      %20 = vector.broadcast %19 : vector<1x32xf32> to vector<8x32xf32>
      %21 = arith.mulf %17, %20 : vector<8x32xf32>
      %c0_19 = arith.constant 0 : index
      %c0_20 = arith.constant 0 : index
      %c0_21 = arith.constant 0 : index
      %22 = vector.load %arg7[%c0_19, %c0_20, %c0_21] : memref<1x1x32xf32, #tpu.memory_space<vmem>>, vector<1x1x32xf32>
      %23 = vector.shape_cast %22 : vector<1x1x32xf32> to vector<1x32xf32>
      %24 = vector.broadcast %23 : vector<1x32xf32> to vector<8x32xf32>
      %25 = arith.addf %21, %24 : vector<8x32xf32>
      %c0_22 = arith.constant 0 : index
      %c0_23 = arith.constant 0 : index
      %c0_24 = arith.constant 0 : index
      %26 = vector.load %arg8[%c0_22, %c0_23, %c0_24] : memref<1x8x32xf32, #tpu.memory_space<vmem>>, vector<1x8x32xf32>
      %27 = vector.shape_cast %26 : vector<1x8x32xf32> to vector<8x32xf32>
      %28 = vector.shape_cast %25 : vector<8x32xf32> to vector<1x8x32xf32>
      tpu.vector_store %arg8[%c0_22, %c0_23, %c0_24], %28 {strides = array<i32>} : memref<1x8x32xf32, #tpu.memory_space<vmem>>, vector<1x8x32xf32>,
    } else {
    }
    return
  }
  func.func @transform_0(%arg0: i32, %arg1: i32, %arg2: i32, %arg3: i32) -> (i32, i32, i32) {
    %c0_i32 = arith.constant 0 : i32
    return %arg0, %arg1, %arg3 : i32, i32, i32
  }
  func.func @transform_1(%arg0: i32, %arg1: i32, %arg2: i32, %arg3: i32) -> (i32, i32) {
    %c0_i32 = arith.constant 0 : i32
    return %arg2, %arg3 : i32, i32
  }
  func.func @transform_2(%arg0: i32, %arg1: i32, %arg2: i32, %arg3: i32) -> (i32, i32, i32) {
    %c0_i32 = arith.constant 0 : i32
    %c0_i32_0 = arith.constant 0 : i32
    return %arg0, %c0_i32, %arg2 : i32, i32, i32
  }
  func.func @transform_3(%arg0: i32, %arg1: i32, %arg2: i32, %arg3: i32) -> (i32, i32, i32) {
    %c0_i32 = arith.constant 0 : i32
    %c0_i32_0 = arith.constant 0 : i32
    return %arg0, %c0_i32, %arg2 : i32, i32, i32
  }
  func.func @transform_4(%arg0: i32, %arg1: i32, %arg2: i32, %arg3: i32) -> (i32, i32, i32) {
    %c0_i32 = arith.constant 0 : i32
    return %arg0, %arg1, %arg2 : i32, i32, i32
  }
}

</mosaic_0001>

<bundles_post_ra>
// kernel: tpu_custom_call.1
= control target key start
LH: loop header
LB: loop body
LE: loop exit
PB: predicated region body
PF: predicated region fallthrough
CT: control target
= control target key end

     0   :  { %9 = vsyncpa [#allocation3], 0  ;;  %s1128_s0 = inlined_call_operand.hbm [shape: f32[2,8,32], index: 0, kind: input, shape index: {}]   ;;  %s1129_s1 = inlined_call_operand.hbm [shape: f32[32,32], index: 1, kind: input, shape index: {}]   ;;  %s1130_s2 = inlined_call_operand.vmem [shape: f32[2,1,32], index: 2, kind: input, shape index: {}]   ;;  %s1131_s3 = inlined_call_operand.vmem [shape: f32[2,1,32], index: 3, kind: input, shape index: {}]   ;;  %s1132_s4 = inlined_call_operand.hbm [shape: f32[2,8,32], index: 4, kind: output, shape index: {}]  }
   0x1   :  { %11 = vsyncpa [#allocation3 + $0x1], 0 }
   0x2   :  { %12 = vsyncpa [#allocation6], 0 }
   0x3   :  { %13 = vsyncpa [#allocation4], 0 }
   0x4   :  { %15 = vsyncpa [#allocation4 + $0x1], 0  ;;  %s892_s15 = smov 0   ;;  %s894_s16 = smov 0  }
   0x5   :  { %s896_s17 = smov 0   ;;  %s898_s18 = smov 0  }
   0x6   :  { %s900_s19 = smov 0   ;;  %s902_s20 = smov 0  }
   0x7 LB: > { %s589_s21 = sadd.s32 4294967295, %s857_s20   ;;  %s590_s22 = sadd.s32 4294967294, %s857_s20   ;;  %s857_s20 = sphi %s902_s20, %s21_s20   ;;  %s853_s19 = sphi %s900_s19, %s1156_s19   ;;  %s849_s18 = sphi %s898_s18, %s1155_s18   ;;  %s845_s17 = sphi %s896_s17, %s1154_s17   ;;  %s841_s16 = sphi %s894_s16, %s1153_s16   ;;  %s837_s15 = sphi %s892_s15, %s1152_s15  }
   0x8   : > { %p71_p0 = scmp.ne.s32.totalorder %s841_s16, %s837_s15  ;;  %p926_p1 = scmp.eq.s32.totalorder %s589_s21, 0 }
   0x9   : > { %p930_p2 = scmp.eq.s32.totalorder %s589_s21, 1  ;;  %p189_p3 = scmp.eq.s32.totalorder %s590_s22, 1 }
   0xa   : > { %s1137_s23 = scalar_select %p926_p1, 1, 0 }
   0xb   : > { %s1138_s24 = scalar_select %p930_p2, 1, 0 }
   0xc   : > { %p936_p4 = por %p926_p1, %p71_p0  ;;  %p591_p5 = scmp.ge.s32.totalorder %s857_s20, 1 }
   0xd   : > { %p941_p6 = por %p189_p3, %p71_p0  ;;  %p196_p7 = scmp.lt.s32.totalorder %s857_s20, 3 }
   0xe   : > { %s1139_s25 = scalar_select %p936_p4, 1, 0 }
   0xf   : > { %s1140_s26 = scalar_select %p941_p6, 1, 0 }
  0x10   : > { %p946_p8 = pnand %p591_p5, %p196_p7  ;;  %s859_s28 = smov [#allocation5]  }
  0x11   : > { %s212_s29 = sshll.u32 %s859_s28, 4  ;;  %s47_s5 = sadd.s32 1, %s853_s19  ;;  %s213_s29 = int_to_ptr.vmem [resolvable:$true] %s212_s29 }
  0x12   : > { %s1141_s27 = scalar_select %p946_p8, 1, 0 }
  0x13   : > { %p643_p9 = pneg %p946_p8  ;;  %s713_s8 = scalar_lea.hbm %s1129_s1, 512 }
  0x14   : > { %p714_p12 = scmp.ne.s32.totalorder %s1129_s1, %s713_s8  ;;  %p720_p5 = scmp.lt.u32.totalorder %s713_s8, %s1129_s1 }
  0x15   : > { %p955_p11 = pnand %p643_p9, %p926_p1 }
  0x17   : > { %p715_p13 = pneg %p955_p11 }
  0x19   : > { %p716_p0 = pnand %p715_p13, %p714_p12 }
  0x1b   : > { %p717_p3 = pneg %p716_p0 }
  0x1d   : > { %p722_p7 = pnand %p720_p5, %p717_p3 }
  0x1f   : > { %725 = shalt.err (!%p722_p7)
}
  0x20   : > { %s726_s13 = scalar_lea.vmem %s213_s29, 512  ;;  %p734_p1 = scmp.lt.s32.totalorder %s213_s29, %s213_s29 }
  0x21   : > { %p727_p9 = scmp.ne.s32.totalorder %s213_s29, %s726_s13  ;;  %p735_p4 = scmp.lt.s32.totalorder %s726_s13, %s726_s13 }
  0x23   : > { %p729_p10 = pnand %p727_p9, %p715_p13  ;;  %p736_p8 = por %p735_p4, %p734_p1 }
  0x25   : > { %p730_p6 = pneg %p729_p10 }
  0x27   : > { %p737_p2 = pnand %p736_p8, %p730_p6 }
  0x29   : > { %740 = shalt.err (!%p737_p2)
}
  0x2a   : > { %s860_s14 = smov 128   ;;  %s861_s21 = smov 8  }
  0x2b   : > { %646 = dma.hbm_to_vmem [thread:$0]  (!%p955_p11), %s1129_s1, 512, %s213_s29, [#allocation6], %s860_s14, %s860_s14, %s861_s21  }
  0x2c   : > { %p49_p1 = scmp.ge.s32.totalorder %s47_s5, 2  ;;  %s58_s6 = sadd.s32 1, %s845_s17 }
  0x2d   : > { %p65_p2 = scmp.ne.s32.totalorder %s845_s17, %s841_s16  ;;  %p66_p4 = scmp.eq.s32.totalorder %s857_s20, 0 }
  0x2e   : > { %s1158_s5 = smov (%p49_p1, %s47_s5), 0  ;;  %p1144_p8 = scmp.ne.s32.totalorder %s1138_s24, 0 }
  0x2f   : > { %p982_p6 = por %p66_p4, %p65_p2  ;;  %s51_s30 = ssub.s32 %s853_s19, %s1158_s5 }
  0x30   : > { %p988_p10 = por %p1144_p8, %p65_p2  ;;  %p656_p12 = scmp.lt.s32.totalorder %s857_s20, 2 }
  0x31   : > { %p56_p11 = scmp.eq.s32.totalorder %s51_s30, 0  ;;  %s226_s29 = sand.u32 1, %s845_s17  }
  0x32   : > { %s594_s9 = sshll.u32 %s226_s29, 3  ;;  %s595_s11 = sshll.u32 %s853_s19, 7 }
  0x33   : > { %s997_s10 = scalar_select %p56_p11, %s845_s17, %s58_s6  }
  0x34   : > { %s1003_s14 = scalar_lea.hbm %s1128_s0, %s595_s11  ;;  %s230_s24 = scalar_lea.vmem [#allocation2], %s594_s9 }
  0x35   : > { %s239_s21 = sshll.u32 %s230_s24, 4  ;;  %p1009_p13 = pnand %p656_p12, %p982_p6  ;;  %s1005_s21 = int_to_ptr.vmem [resolvable:$true] %s239_s21 }
  0x36   : > { %s227_s28 = scalar_lea.sflag [#allocation3], %s226_s29  ;;  %s741_s6 = scalar_lea.hbm %s1003_s14, 128 }
  0x37   : > { %p742_p0 = scmp.ne.s32.totalorder %s1003_s14, %s741_s6  ;;  %p743_p3 = pneg %p1009_p13 }
  0x38   : > { %s746_s11 = scalar_lea.hbm %s1128_s0, 256  ;;  %p747_p9 = scmp.lt.u32.totalorder %s1003_s14, %s1128_s0 }
  0x39   : > { %p744_p5 = pnand %p743_p3, %p742_p0  ;;  %p748_p1 = scmp.lt.u32.totalorder %s746_s11, %s741_s6 }
  0x3a   : > { %p750_p4 = scmp.lt.u32.totalorder %s741_s6, %s1003_s14 }
  0x3b   : > { %p745_p7 = pneg %p744_p5  ;;  %p749_p2 = por %p748_p1, %p747_p9 }
  0x3d   : > { %p751_p6 = por %p750_p4, %p749_p2 }
  0x3f   : > { %p752_p8 = pnand %p751_p6, %p745_p7 }
  0x41   : > { %755 = shalt.err (!%p752_p8)
}
  0x42   : > { %s756_s29 = scalar_lea.vmem %s1005_s21, 128  ;;  %s862_s13 = smov [#allocation2]  }
  0x43   : > { %p757_p12 = scmp.ne.s32.totalorder %s1005_s21, %s756_s29  ;;  %s761_s24 = sshll.u32 %s862_s13, 4  ;;  %s762_s24 = int_to_ptr.vmem [resolvable:$false] %s761_s24 }
  0x44   : > { %s763_s30 = scalar_lea.vmem %s762_s24, 256  ;;  %p764_p5 = scmp.lt.s32.totalorder %s1005_s21, %s762_s24 }
  0x45   : > { %p759_p11 = pnand %p757_p12, %p743_p3  ;;  %p765_p9 = scmp.lt.s32.totalorder %s763_s30, %s756_s29 }
  0x47   : > { %p760_p0 = pneg %p759_p11  ;;  %p766_p1 = por %p765_p9, %p764_p5 }
  0x49   : > { %p767_p2 = pnand %p766_p1, %p760_p0 }
  0x4b   : > { %770 = shalt.err (!%p767_p2)
}
  0x4c   : > { %650 = dma.hbm_to_vmem [thread:$0]  (!%p1009_p13), %s1003_s14, 128, %s1005_s21, %s227_s28  }
  0x4d   : > { %p1147_p7 = scmp.ne.s32.totalorder %s1141_s27, 0 }
  0x4e   : > { %s1041_s6 = sand.u32 (!%p1147_p7), 1, %s841_s16   ;;  %p1148_p3 = scmp.ne.s32.totalorder (!%p1147_p7), %s1139_s25, 0 }
  0x4f   : > { %266 = sbr.rel (%p1147_p7) target bundleno = 349 (0x15d), region = 36  ;;  %s597_s9 = sshll.u32 (!%p1147_p7), %s1041_s6, 3 }
  0x50   : > { %s269_s11 = scalar_lea.sflag (!%p1147_p7), [#allocation3], %s1041_s6  ;;  %s272_s7 = scalar_lea.vmem (!%p1147_p7), [#allocation2], %s597_s9 }
  0x56   : > { %824 = dma.done.wait (%p1148_p3), %s269_s11, 128  }
  0x57   : > { %826 = vsyncadd (%p1148_p3), %s269_s11, 4294967168  ;;  %p1149_p4 = scmp.ne.s32.totalorder %s1137_s23, 0 }
  0x59   : > { %828 = dma.done.wait (%p1149_p4), [#allocation6], 512  }
  0x5a   : > { %830 = vsyncadd (%p1149_p4), [#allocation6], 4294966784  ;;  %vm330_vm0 = vcmask 261120   ;;  %v863_v0 = vmov 0.0|0.0   ;;  %s1053_s27 = scalar_lea.vmem [#allocation7], %s597_s9  ;;  %v864_v1 = vmov 0.0  }
  0x5b   : > { %627 = vmatprep.subr.bf16.mxu0 %v863_v0  ;;  %331 = vst.msk [vmem:[%s1053_s27] sm:$0xff] %vm330_vm0, %v864_v1  ;;  %vm865_vm1 = vmmov 0   ;;  %v334_v2 = vld [vmem:[#allocation5] sm:$0xff]  ;;  %v335_v3 = vld [vmem:[#allocation5 + $0x8] sm:$0xff]  ;;  %vm629_vm2 = vmpackc.low %vm330_vm0, %vm330_vm0  ;;  %p314_p13 = scmp.lt.s32.totalorder %s849_s18, 1  ;;  %s608_s29 = sshll.u32 %s849_s18, 7 }
  0x5c   : > { %624 = vmatprep.mubr.msk.f32.mxu0 %vm865_vm1, %v864_v1  ;;  %v628_v4 = vpack.c.bf16 %v335_v3, %v334_v2  ;;  %v336_v5 = vld [vmem:[#allocation5 + $0x10] sm:$0xff]  ;;  %v337_v6 = vld [vmem:[#allocation5 + $0x18] sm:$0xff]  ;;  %s463_s13 = sshll.u32 %s1053_s27, 4  ;;  %s1077_s9 = scalar_lea.hbm %s1132_s4, %s608_s29  ;;  %s1079_s13 = int_to_ptr.vmem [resolvable:$true] %s463_s13 }
  0x5d   : > { %v632_v7 = vpack.c.bf16 %v337_v6, %v336_v5  ;;  %v333_v8 = vld [vmem:[%s272_s7] sm:$0xff]  ;;  %s315_s23 = scalar_select %p314_p13, %s849_s18, 1 }
  0x5e   : > { %630 = vmatpush3.bf16.xpose.msk.msra.mxu0 %vm629_vm2, %v628_v4  ;;  %s448_s11 = scalar_lea.sflag [#allocation4], %s1041_s6  ;;  %s771_s7 = scalar_lea.vmem %s1079_s13, 128 }
  0x5f   : > { %631 = vmatprep.subr.bf16.mxu0 %v863_v0  ;;  %s319_s21 = scalar_lea.vmem %s1130_s2, %s315_s23  ;;  %s325_s12 = scalar_lea.vmem %s1131_s3, %s315_s23 }
  0x60   : > { %v605_v13 = vld [vmem:[%s319_s21] ss:$0 sm:$0xff]  ;;  %p772_p6 = scmp.ne.s32.totalorder %s1079_s13, %s771_s7  ;;  %s866_s18 = smov [#allocation7]  }
  0x61   : > { %v606_v15 = vld [vmem:[%s325_s12] ss:$0 sm:$0xff]  ;;  %s775_s23 = sshll.u32 %s866_s18, 4  ;;  %s776_s23 = int_to_ptr.vmem [resolvable:$false] %s775_s23 }
  0x62   : > { %v332_v9 = vld [vmem:[%s1053_s27] sm:$0xff]  ;;  %p773_p8 = pnand %p772_p6, %p988_p10  ;;  %s777_s25 = scalar_lea.vmem %s776_s23, 256 }
  0x63   : > { %p778_p11 = scmp.lt.s32.totalorder %s1079_s13, %s776_s23  ;;  %p779_p0 = scmp.lt.s32.totalorder %s777_s25, %s771_s7 }
  0x64   : > { %p774_p12 = pneg %p773_p8 }
  0x65   : > { %p780_p5 = por %p779_p0, %p778_p11 }
  0x66   : > { %634 = vmatpush3.bf16.xpose.msk.msra.mxu0 %vm629_vm2, %v632_v7 }
  0x67   : > { %p781_p9 = pnand %p780_p5, %p774_p12 }
  0x6d   : > { %625 = vmatmul.mubr.msk.f32.vlgmr.msra.gmra.mrb[0].mxu0 %vm330_vm0, %v333_v8 }
 0x140   : > { %v420_v10 = vpop.f32.mrb[0].mxu0 }
 0x141   : > { %v424_v11 = vadd.f32 %v420_v10, %v332_v9  ;;  %v626_v12 = vpop.f32.mrb[1].mxu0 }
 0x143   : > { %425 = vst.msk [vmem:[%s1053_s27] sm:$0xff] %vm330_vm0, %v424_v11 }
 0x14a   : > { %v429_v14 = vld [vmem:[%s1053_s27] sm:$0xff] }
 0x14b   : > { %v437_v16 = vmul.f32 %v605_v13, %v429_v14 }
 0x14d   : > { %v445_v17 = vadd.f32 %v606_v15, %v437_v16 }
 0x14f   : > { %446 = vst.msk [vmem:[%s1053_s27] sm:$0xff] %vm330_vm0, %v445_v17 }
 0x150   : > { %784 = shalt.err (!%p781_p9)
}
 0x151   : > { %s785_s6 = scalar_lea.hbm %s1077_s9, 128  ;;  %s789_s21 = scalar_lea.hbm %s1132_s4, 256 }
 0x152   : > { %p786_p1 = scmp.ne.s32.totalorder %s1077_s9, %s785_s6  ;;  %p790_p3 = scmp.lt.u32.totalorder %s1077_s9, %s1132_s4 }
 0x153   : > { %p791_p4 = scmp.lt.u32.totalorder %s789_s21, %s785_s6  ;;  %p793_p6 = scmp.lt.u32.totalorder %s785_s6, %s1077_s9 }
 0x154   : > { %p787_p2 = pnand %p786_p1, %p988_p10 }
 0x155   : > { %p792_p13 = por %p791_p4, %p790_p3 }
 0x156   : > { %p788_p7 = pneg %p787_p2 }
 0x157   : > { %p794_p8 = por %p793_p6, %p792_p13 }
 0x159   : > { %p795_p12 = pnand %p794_p8, %p788_p7 }
 0x15b   : > { %798 = shalt.err (!%p795_p12)
}
 0x15c   : > { %641 = dma.vmem_to_hbm [thread:$0]  (%p988_p10), %s1079_s13, 128, %s1077_s9, %s448_s11  }
 0x15d PF: > { %s475_s12 = sand.u32 1, %s837_s15   ;;  %p1150_p11 = scmp.ne.s32.totalorder %s1140_s26, 0 }
 0x15e   : > { %p1151_p0 = scmp.ge.s32.totalorder %s857_s20, 2  ;;  %s476_s29 = scalar_lea.sflag [#allocation4], %s475_s12 }
 0x160   : > { %p652_p5 = pnand %p1151_p0, %p1150_p11 }
 0x162   : > { %832 = dma.done.wait (!%p652_p5), %s476_s29, 128  }
 0x163   : > { %834 = vsyncadd (!%p652_p5), %s476_s29, 4294967168  ;;  %s21_s20 = sadd.s32 1, %s857_s20   ;;  %s1152_s15 = smov %s841_s16 }
 0x164   : > { %p18_p9 = scmp.ge.s32.totalorder %s21_s20, 4   ;;  %s1153_s16 = smov %s845_s17 }
 0x165   : > { %s1154_s17 = smov %s997_s10  ;;  %s1155_s18 = smov %s853_s19 }
 0x166   : > { %s1156_s19 = smov %s1158_s5  ;;  %20 = sbr.rel (!%p18_p9) target bundleno = 7 (0x7), region = 100 }
 0x16d   :  { %481 = vsyncpa [#allocation3], 1 }
 0x16e   :  { %483 = vsyncpa [#allocation3 + $0x1], 1 }
 0x16f   :  { %484 = vsyncpa [#allocation6], 1 }
 0x170   :  { %485 = vsyncpa [#allocation4], 1 }
 0x171   :  { %487 = vsyncpa [#allocation4 + $0x1], 1 }

</bundles_post_ra>
